<compile_context>
chip_gen: v6e
topology: v6e:2x2x1
jax: 0.10.0
libtpu: 0.0.40
codegen_flags: <defaults>
</compile_context>

<pallas_src>
import jax
import jax.numpy as jnp
from jax.experimental import pallas as pl
from jax.experimental.pallas import tpu as pltpu

_LANES = 128                 # vreg lane width (last dim)
_MAX_TILE_ROWS = 8192        # 8192 x 128 x 4B = 4 MiB / block; ~16 MiB pipelined
_SPLIT_THRESHOLD_ROWS = 1024 # above this, use >= 2 blocks so v7x megacore engages
_VMEM_LIMIT_BYTES = 32 * 1024 * 1024  # covers double-buffered in+out with headroom;
                                      # < v7x 64 MiB physical, > v5e 16 MiB default


def _round_up(x, m):
    return ((x + m - 1) // m) * m


def _logistic_kernel(w_ref, b_ref, x_ref, o_ref):
    # w_ref: SMEM (1,)   b_ref: SMEM (1,)   x_ref/o_ref: VMEM (tile_rows, 128)
    w0 = w_ref[0]
    b0 = b_ref[0]
    z = x_ref[...] * w0 + b0                       # VPU FMA
    # sigmoid(z) == 0.5 * tanh(z/2) + 0.5 : single EUP transcendental, hidden
    # under the HBM DMA (exp + divide would be 2 EUP ops and can become the
    # bottleneck at v7x's 3.2 TB/s).
    o_ref[...] = 0.5 * jnp.tanh(0.5 * z) + 0.5


def _logistic_main(x2d, w, b, tile_rows, grid):
    rows = x2d.shape[0]
    return pl.pallas_call(
        _logistic_kernel,
        out_shape=jax.ShapeDtypeStruct((rows, _LANES), jnp.float32),
        grid=(grid,),
        in_specs=[
            pl.BlockSpec(memory_space=pltpu.MemorySpace.SMEM),    # w, whole array
            pl.BlockSpec(memory_space=pltpu.MemorySpace.SMEM),    # b, whole array
            pl.BlockSpec((tile_rows, _LANES), lambda i: (i, 0)),  # x tile
        ],
        out_specs=pl.BlockSpec((tile_rows, _LANES), lambda i: (i, 0)),
        compiler_params=pltpu.CompilerParams(
            dimension_semantics=("parallel",),        # megacore sharding on v7x
            vmem_limit_bytes=_VMEM_LIMIT_BYTES,
        ),
    )(w, b, x2d)


@jax.jit
def logistic_forward(x, w, b):
    """x: (N, 1) f32, w: (1,) f32, b: () f32 -> (N,) f32  (h = sigmoid(X @ w + b))."""
    x = jnp.asarray(x, jnp.float32)
    n, d = x.shape
    assert d == 1, "Logistic module has a single feature (w has shape (1,))"
    w = jnp.asarray(w, jnp.float32).reshape((1,))
    b = jnp.asarray(b, jnp.float32).reshape((1,))

    x1 = x.reshape(n)            # (N,1) -> (N,): metadata-only
    rows = n // _LANES
    n_main = rows * _LANES
    tail = n - n_main

    outs = []
    if rows > 0:
        # Zero-copy reshape of the 128-aligned prefix (no jnp.pad of the full array).
        x2d = x1[:n_main].reshape(rows, _LANES)
        if rows <= _SPLIT_THRESHOLD_ROWS:
            # Single full-extent block (valid even when rows % 8 != 0).
            tile_rows = rows
        else:
            # >= 2 blocks (v7x: both TensorCores), each a multiple of 8 rows,
            # capped at 4 MiB; Pallas masks the partial last block.
            nblocks = max(2, pl.cdiv(rows, _MAX_TILE_ROWS))
            tile_rows = min(_MAX_TILE_ROWS,
                            _round_up(pl.cdiv(rows, nblocks), 8))
        grid = pl.cdiv(rows, tile_rows)
        h_main = _logistic_main(x2d, w, b, tile_rows, grid).reshape(n_main)
        outs.append(h_main)

    if tail > 0:
        # <=127-element remainder: one vreg of work, handled with plain jnp.
        z_tail = x1[n_main:] * w[0] + b[0]
        outs.append(jax.nn.sigmoid(z_tail))

    if len(outs) == 1:
        return outs[0]
    return jnp.concatenate(outs)


if __name__ == "__main__":
    key = jax.random.PRNGKey(0)
    kx, kw, kx2 = jax.random.split(key, 3)

    # Deterministic parameter init mirroring the module's __init__:
    #   w = Normal(0.0, 0.1).sample((1,))   b = tensor(0.0)
    w = 0.1 * jax.random.normal(kw, (1,), dtype=jnp.float32)
    b = jnp.zeros((), dtype=jnp.float32)

    # Small shape, 128-aligned: exercises the pure zero-copy kernel path.
    N, D = 512, 1
    x = jax.random.normal(kx, (N, D), dtype=jnp.float32)
    h = jax.block_until_ready(logistic_forward(x, w, b))
    ref = jax.nn.sigmoid(x @ w + b)
    assert h.shape == (N,)
    assert jnp.allclose(h, ref, atol=1e-5, rtol=1e-5)

    # Ragged-N path: kernel on the aligned prefix + jnp tail.
    N2 = 300
    x2 = jax.random.normal(kx2, (N2, D), dtype=jnp.float32)
    h2 = jax.block_until_ready(logistic_forward(x2, w, b))
    ref2 = jax.nn.sigmoid(x2 @ w + b)
    assert h2.shape == (N2,)
    assert jnp.allclose(h2, ref2, atol=1e-5, rtol=1e-5)

    print("KERNEL_OK")
</pallas_src>

<mosaic_0001>
module attributes {stable_mosaic.version = 11 : i64} {
  func.func @_logistic_kernel(%arg0: i32, %arg1: memref<1xf32, #tpu.memory_space<smem>>, %arg2: memref<1xf32, #tpu.memory_space<smem>>, %arg3: memref<4x128xf32, #tpu.memory_space<vmem>>, %arg4: memref<4x128xf32, #tpu.memory_space<vmem>>) attributes {dimension_semantics = [#tpu.dimension_semantics<parallel>], iteration_bounds = array<i64: 1>, scalar_prefetch = 0 : i64, scratch_operands = 0 : i64, tpu.core_type = #tpu.core_type<tc>, window_params = [{transform_indices = @transform_0, window_bounds = array<i64: 1>}, {transform_indices = @transform_1, window_bounds = array<i64: 1>}, {transform_indices = @transform_2, window_bounds = array<i64: 4, 128>}, {transform_indices = @transform_3, window_bounds = array<i64: 4, 128>}]} {
    %c0 = arith.constant 0 : index
    %0 = memref.load %arg1[%c0] : memref<1xf32, #tpu.memory_space<smem>>
    %c0_0 = arith.constant 0 : index
    %1 = memref.load %arg2[%c0_0] : memref<1xf32, #tpu.memory_space<smem>>
    %c0_1 = arith.constant 0 : index
    %c0_2 = arith.constant 0 : index
    %2 = vector.load %arg3[%c0_1, %c0_2] : memref<4x128xf32, #tpu.memory_space<vmem>>, vector<4x128xf32>
    %3 = vector.broadcast %0 : f32 to vector<4x128xf32>
    %4 = arith.mulf %2, %3 : vector<4x128xf32>
    %5 = vector.broadcast %1 : f32 to vector<4x128xf32>
    %6 = arith.addf %4, %5 : vector<4x128xf32>
    %cst = arith.constant 5.000000e-01 : f32
    %7 = vector.broadcast %cst : f32 to vector<4x128xf32>
    %8 = arith.mulf %7, %6 : vector<4x128xf32>
    %9 = math.tanh %8 : vector<4x128xf32>
    %cst_3 = arith.constant 5.000000e-01 : f32
    %10 = vector.broadcast %cst_3 : f32 to vector<4x128xf32>
    %11 = arith.mulf %10, %9 : vector<4x128xf32>
    %cst_4 = arith.constant 5.000000e-01 : f32
    %12 = vector.broadcast %cst_4 : f32 to vector<4x128xf32>
    %13 = arith.addf %11, %12 : vector<4x128xf32>
    %c0_5 = arith.constant 0 : index
    %c0_6 = arith.constant 0 : index
    %14 = vector.load %arg4[%c0_5, %c0_6] : memref<4x128xf32, #tpu.memory_space<vmem>>, vector<4x128xf32>
    tpu.vector_store %arg4[%c0_5, %c0_6], %13 {strides = array<i32>} : memref<4x128xf32, #tpu.memory_space<vmem>>, vector<4x128xf32>,
    return
  }
  func.func @transform_0(%arg0: i32) -> i32 {
    %c0_i32 = arith.constant 0 : i32
    %c0_i32_0 = arith.constant 0 : i32
    return %c0_i32 : i32
  }
  func.func @transform_1(%arg0: i32) -> i32 {
    %c0_i32 = arith.constant 0 : i32
    %c0_i32_0 = arith.constant 0 : i32
    return %c0_i32 : i32
  }
  func.func @transform_2(%arg0: i32) -> (i32, i32) {
    %c0_i32 = arith.constant 0 : i32
    %c0_i32_0 = arith.constant 0 : i32
    return %arg0, %c0_i32 : i32, i32
  }
  func.func @transform_3(%arg0: i32) -> (i32, i32) {
    %c0_i32 = arith.constant 0 : i32
    %c0_i32_0 = arith.constant 0 : i32
    return %arg0, %c0_i32 : i32, i32
  }
}

</mosaic_0001>

<bundles_post_ra>
// kernel: logistic_forward.1
= control target key start
LH: loop header
LB: loop body
LE: loop exit
PB: predicated region body
PF: predicated region fallthrough
CT: control target
= control target key end

     0   :  { %s101_s0 = inlined_call_operand.<no memory space> [shape: f32[1], index: 0, kind: input, shape index: {}]   ;;  %s102_s1 = inlined_call_operand.<no memory space> [shape: f32[1], index: 1, kind: input, shape index: {}]   ;;  %s103_s2 = inlined_call_operand.vmem [shape: f32[4,128], index: 2, kind: input, shape index: {}]   ;;  %s104_s3 = inlined_call_operand.hbm [shape: f32[4,128], index: 3, kind: output, shape index: {}]  }
   0x1   :  { %v19_v0 = vld [vmem:[%s103_s2] sm:$0xf]  ;;  %v20_v1 = vstv %s101_s0  ;;  %v22_v2 = vstv %s102_s1 }
   0x2   :  { %10 = vsyncpa [#allocation5], 0  ;;  %v21_v3 = vmul.f32 %v20_v1, %v19_v0  ;;  %s68_s18 = smov [#allocation4]  }
   0x3   :  { %s35_s19 = sshll.u32 %s68_s18, 4  ;;  %s36_s19 = int_to_ptr.vmem [resolvable:$true] %s35_s19 }
   0x4   :  { %v23_v4 = vadd.f32 %v22_v2, %v21_v3  ;;  %s46_s2 = scalar_lea.vmem %s36_s19, 64  ;;  %p51_p1 = scmp.lt.s32.totalorder %s36_s19, %s36_s19 }
   0x5   :  { %p47_p0 = scmp.ne.s32.totalorder %s36_s19, %s46_s2  ;;  %p52_p2 = scmp.lt.s32.totalorder %s46_s2, %s46_s2 }
   0x6   :  { %v24_v5 = vmul.f32 0.5, %v23_v4 }
   0x7   :  { %p53_p3 = por %p52_p2, %p51_p1 }
   0x8   :  { %44 = vtanh.f32 %v24_v5 }
   0x9   :  { %p54_p4 = pnand %p53_p3, %p47_p0 }
  0x15   :  { %v45_v6 = vpop.eup %44 }
  0x16   :  { %v26_v7 = vmul.f32 0.5, %v45_v6 }
  0x18   :  { %v27_v8 = vadd.f32 0.5, %v26_v7 }
  0x1a   :  { %28 = vst [vmem:[#allocation4] sm:$0xf] %v27_v8 }
  0x1b   :  { %57 = shalt.err (!%p54_p4)
}
  0x1c   :  { %38 = dma.vmem_to_hbm [thread:$0]  %s36_s19, 64, %s104_s3, [#allocation5]  }
  0x1d   :  { %66 = dma.done.wait [#allocation5], 64  }
  0x1e   :  { %67 = vsyncadd [#allocation5], 4294967232 }
  0x1f   :  { %42 = vsyncpa [#allocation5], 1 }

</bundles_post_ra>
